<compile_context>
chip_gen: v5e
topology: v5e:2x2
jax: 0.10.0
libtpu: 0.0.40
codegen_flags: <defaults>
</compile_context>

<pallas_src>
import functools

import numpy as np
import jax
import jax.numpy as jnp
from jax.experimental import pallas as pl
from jax.experimental.pallas import tpu as pltpu

BN_EPS = 1e-5


# ----------------------------------------------------------------------------
# Pallas kernels
# ----------------------------------------------------------------------------
def _apply_act(v, kind, alpha):
    if kind == "relu":
        return jnp.maximum(v, 0.0)
    if kind == "prelu":
        return jnp.where(v >= 0.0, v, alpha * v)
    return v


def _conv_bn_act_kernel(act, w_ref, sc_ref, sh_ref, a_ref, alpha_ref, o_ref):
    # o = act((W @ A) * scale + shift)   -- channels on sublanes, pixels on lanes
    alpha = alpha_ref[...]                                   # (1, 1) broadcast
    acc = jnp.dot(w_ref[...], a_ref[...], preferred_element_type=jnp.float32)
    acc = acc * sc_ref[...] + sh_ref[...]
    o_ref[...] = _apply_act(acc, act, alpha)


def _fused_tail_kernel(act, w2_ref, sc2_ref, sh2_ref, w3_ref, sc3_ref, sh3_ref,
                       p_ref, x_ref, alpha_ref, o_ref):
    # h = act(BN2(conv2(patches))) ; y = act(BN3(conv3(h))) ; o = act(y + x)
    alpha = alpha_ref[...]
    h = jnp.dot(w2_ref[...], p_ref[...], preferred_element_type=jnp.float32)
    h = _apply_act(h * sc2_ref[...] + sh2_ref[...], act, alpha)
    y = jnp.dot(w3_ref[...], h, preferred_element_type=jnp.float32)
    y = _apply_act(y * sc3_ref[...] + sh3_ref[...], act, alpha)
    o_ref[...] = _apply_act(y + x_ref[...], act, alpha)


# ----------------------------------------------------------------------------
# Pallas wrappers
# ----------------------------------------------------------------------------
def _pick_tm(m):
    """Largest pixel tile that divides M exactly and keeps >=2 grid steps."""
    for tm in (512, 256, 128):
        if m % tm == 0 and m // tm >= 2:
            return tm
    return m  # single full-extent block (still legal: block == full array dim)


def conv_bn_act(w_t, scale, shift, a_t, act, alpha):
    """act((W @ A) * scale + shift). w_t:(Cout,K), a_t:(K,M), scale/shift:(Cout,1)."""
    cout, k = w_t.shape
    m = a_t.shape[1]
    tm = _pick_tm(m)
    kernel = functools.partial(_conv_bn_act_kernel, act)
    return pl.pallas_call(
        kernel,
        out_shape=jax.ShapeDtypeStruct((cout, m), jnp.float32),
        grid=(m // tm,),
        in_specs=[
            pl.BlockSpec((cout, k), lambda i: (0, 0)),
            pl.BlockSpec((cout, 1), lambda i: (0, 0)),
            pl.BlockSpec((cout, 1), lambda i: (0, 0)),
            pl.BlockSpec((k, tm), lambda i: (0, i)),
            pl.BlockSpec((1, 1), lambda i: (0, 0)),
        ],
        out_specs=pl.BlockSpec((cout, tm), lambda i: (0, i)),
        compiler_params=pltpu.CompilerParams(dimension_semantics=("parallel",)),
    )(w_t, scale, shift, a_t, alpha)


def fused_tail(w2_t, sc2, sh2, w3_t, sc3, sh3, p_t, x_t, act, alpha):
    """Fused conv2(+BN+act) -> conv3(+BN+act) -> residual add -> out act."""
    ci, k2 = w2_t.shape
    c = w3_t.shape[0]
    m = p_t.shape[1]
    tm = _pick_tm(m)
    kernel = functools.partial(_fused_tail_kernel, act)
    return pl.pallas_call(
        kernel,
        out_shape=jax.ShapeDtypeStruct((c, m), jnp.float32),
        grid=(m // tm,),
        in_specs=[
            pl.BlockSpec((ci, k2), lambda i: (0, 0)),
            pl.BlockSpec((ci, 1), lambda i: (0, 0)),
            pl.BlockSpec((ci, 1), lambda i: (0, 0)),
            pl.BlockSpec((c, ci), lambda i: (0, 0)),
            pl.BlockSpec((c, 1), lambda i: (0, 0)),
            pl.BlockSpec((c, 1), lambda i: (0, 0)),
            pl.BlockSpec((k2, tm), lambda i: (0, i)),
            pl.BlockSpec((c, tm), lambda i: (0, i)),
            pl.BlockSpec((1, 1), lambda i: (0, 0)),
        ],
        out_specs=pl.BlockSpec((c, tm), lambda i: (0, i)),
        compiler_params=pltpu.CompilerParams(dimension_semantics=("parallel",)),
    )(w2_t, sc2, sh2, w3_t, sc3, sh3, p_t, x_t, alpha)


# ----------------------------------------------------------------------------
# Host-side glue (im2col for the kxk conv, stride 1, 'same' output size)
# ----------------------------------------------------------------------------
def _im2col_t(a_t, n, h, w, kh, kw, pad_h, pad_w, dilation):
    """(C, N*H*W) -> (kh*kw*C, N*H*W), row = (i*kw+j)*C + cin (shift-major)."""
    assert 2 * pad_h == dilation * (kh - 1), "conv must preserve spatial size"
    assert 2 * pad_w == dilation * (kw - 1), "conv must preserve spatial size"
    c = a_t.shape[0]
    a = a_t.reshape(c, n, h, w)
    a = jnp.pad(a, ((0, 0), (0, 0), (pad_h, pad_h), (pad_w, pad_w)))
    rows = []
    for i in range(kh):
        for j in range(kw):
            di, dj = i * dilation, j * dilation
            rows.append(a[:, :, di:di + h, dj:dj + w])
    return jnp.concatenate(rows, axis=0).reshape(kh * kw * c, n * h * w)


def _fold_bn(layer):
    """Eval-mode BN (+ optional conv bias) -> per-channel scale/shift, (C,1)."""
    bn = layer["bn"]
    scale = bn["gamma"] * jax.lax.rsqrt(bn["var"] + BN_EPS)
    b = layer["b"] if layer["b"] is not None else 0.0
    shift = bn["beta"] + scale * (b - bn["mean"])
    return scale[:, None], shift[:, None]


# ----------------------------------------------------------------------------
# Module: parameters + forward
# ----------------------------------------------------------------------------
def _to_gemm(w_oihw):
    """(Cout,Cin,kh,kw) -> (Cout, kh*kw*Cin), matching the im2col row order."""
    cout = w_oihw.shape[0]
    return jnp.transpose(w_oihw, (0, 2, 3, 1)).reshape(cout, -1)


def make_regular_bottleneck(key, channels, internal_ratio=4, kernel_size=3,
                            dilation=1, padding=1, asymmetric=False,
                            dropout_prob=0.0, bias=False, relu=True):
    assert 1 < internal_ratio < channels, "The value of the internal_ratio is not correct"
    internal = channels // internal_ratio
    ks = jax.random.split(key, 10)

    def conv_layer(kw_key, kb_key, cout, cin, kh, kw):
        fan_in = cin * kh * kw
        bound = 1.0 / np.sqrt(fan_in)
        w = jax.random.uniform(kw_key, (cout, cin, kh, kw), jnp.float32, -bound, bound)
        b = (jax.random.uniform(kb_key, (cout,), jnp.float32, -bound, bound)
             if bias else None)
        bn = {"gamma": jnp.ones((cout,), jnp.float32),
              "beta": jnp.zeros((cout,), jnp.float32),
              "mean": jnp.zeros((cout,), jnp.float32),
              "var": jnp.ones((cout,), jnp.float32)}
        return {"w_oihw": w, "wT": _to_gemm(w), "b": b, "bn": bn}

    params = {"conv1": conv_layer(ks[0], ks[1], internal, channels, 1, 1),
              "conv3": conv_layer(ks[6], ks[7], channels, internal, 1, 1),
              "prelu_alpha": jnp.full((1, 1), 0.25, jnp.float32)}
    if asymmetric:
        params["conv2a"] = conv_layer(ks[2], ks[3], internal, internal, kernel_size, 1)
        params["conv2b"] = conv_layer(ks[4], ks[5], internal, internal, 1, kernel_size)
    else:
        params["conv2"] = conv_layer(ks[2], ks[3], internal, internal,
                                     kernel_size, kernel_size)
    cfg = dict(channels=channels, internal=internal, kernel_size=kernel_size,
               dilation=dilation, padding=padding, asymmetric=asymmetric,
               dropout_prob=dropout_prob, relu=relu)
    return params, cfg


def build_forward(cfg):
    act = "relu" if cfg["relu"] else "prelu"
    k, d, p = cfg["kernel_size"], cfg["dilation"], cfg["padding"]
    asym = cfg["asymmetric"]

    def forward(params, x):
        n, c, h, w = x.shape
        m = n * h * w
        alpha = params["prelu_alpha"]
        # NCHW -> (C, N*H*W): pixels on lanes, channels on sublanes.
        x_t = jnp.transpose(x.astype(jnp.float32), (1, 0, 2, 3)).reshape(c, m)

        sc1, sh1 = _fold_bn(params["conv1"])
        ext = conv_bn_act(params["conv1"]["wT"], sc1, sh1, x_t, act, alpha)

        if asym:
            sc2a, sh2a = _fold_bn(params["conv2a"])
            pa = _im2col_t(ext, n, h, w, k, 1, p, 0, d)
            ext = conv_bn_act(params["conv2a"]["wT"], sc2a, sh2a, pa, act, alpha)
            sc2, sh2 = _fold_bn(params["conv2b"])
            pb = _im2col_t(ext, n, h, w, 1, k, 0, p, d)
            w2_t = params["conv2b"]["wT"]
        else:
            sc2, sh2 = _fold_bn(params["conv2"])
            pb = _im2col_t(ext, n, h, w, k, k, p, p, d)
            w2_t = params["conv2"]["wT"]

        sc3, sh3 = _fold_bn(params["conv3"])
        # conv2 + BN + act + conv3 + BN + act + Dropout2d(identity) + residual
        # + out activation, all in ONE kernel.
        out_t = fused_tail(w2_t, sc2, sh2, params["conv3"]["wT"], sc3, sh3,
                           pb, x_t, act, alpha)
        return jnp.transpose(out_t.reshape(c, n, h, w), (1, 0, 2, 3))

    return forward


# ----------------------------------------------------------------------------
# Pure-JAX reference (correctness oracle)
# ----------------------------------------------------------------------------
def ref_forward(params, cfg, x):
    if cfg["relu"]:
        act_fn = lambda v: jnp.maximum(v, 0.0)
    else:
        a = params["prelu_alpha"][0, 0]
        act_fn = lambda v: jnp.where(v >= 0.0, v, a * v)

    def conv_bn(hh, layer, pad_hw, dil_hw):
        y = jax.lax.conv_general_dilated(
            hh, layer["w_oihw"], (1, 1),
            [(pad_hw[0], pad_hw[0]), (pad_hw[1], pad_hw[1])],
            rhs_dilation=dil_hw,
            dimension_numbers=("NCHW", "OIHW", "NCHW"),
            precision=jax.lax.Precision.HIGHEST)
        if layer["b"] is not None:
            y = y + layer["b"][None, :, None, None]
        bn = layer["bn"]
        sc = bn["gamma"] / jnp.sqrt(bn["var"] + BN_EPS)
        sh = bn["beta"] - bn["mean"] * sc
        return y * sc[None, :, None, None] + sh[None, :, None, None]

    k, d, p = cfg["kernel_size"], cfg["dilation"], cfg["padding"]
    x = x.astype(jnp.float32)
    e = act_fn(conv_bn(x, params["conv1"], (0, 0), (1, 1)))
    if cfg["asymmetric"]:
        e = act_fn(conv_bn(e, params["conv2a"], (p, 0), (d, d)))
        e = act_fn(conv_bn(e, params["conv2b"], (0, p), (d, d)))
    else:
        e = act_fn(conv_bn(e, params["conv2"], (p, p), (d, d)))
    e = act_fn(conv_bn(e, params["conv3"], (0, 0), (1, 1)))
    return act_fn(e + x)   # Dropout2d is identity (eval / p=0)


# ----------------------------------------------------------------------------
if __name__ == "__main__":
    key = jax.random.PRNGKey(0)
    pkey1, pkey2, xkey = jax.random.split(key, 3)

    n, channels, hh, ww = 2, 16, 16, 16
    x = jax.random.normal(xkey, (n, channels, hh, ww), jnp.float32)

    # Config 1: default RegularBottleneck(channels=16) -> regular 3x3, ReLU.
    params1, cfg1 = make_regular_bottleneck(pkey1, channels=channels)
    fwd1 = jax.jit(build_forward(cfg1))
    out1 = jax.block_until_ready(fwd1(params1, x))
    assert out1.shape == (n, channels, hh, ww), out1.shape
    ref1 = ref_forward(params1, cfg1, x)
    np.testing.assert_allclose(np.asarray(out1), np.asarray(ref1),
                               rtol=1e-2, atol=1e-2)

    # Config 2: asymmetric (3,1)/(1,3), dilation=2, PReLU branch.
    params2, cfg2 = make_regular_bottleneck(
        pkey2, channels=channels, kernel_size=3, dilation=2, padding=2,
        asymmetric=True, relu=False)
    fwd2 = jax.jit(build_forward(cfg2))
    out2 = jax.block_until_ready(fwd2(params2, x))
    assert out2.shape == (n, channels, hh, ww), out2.shape
    ref2 = ref_forward(params2, cfg2, x)
    np.testing.assert_allclose(np.asarray(out2), np.asarray(ref2),
                               rtol=1e-2, atol=1e-2)

    assert bool(jnp.all(jnp.isfinite(out1))) and bool(jnp.all(jnp.isfinite(out2)))
    print("KERNEL_OK")
</pallas_src>

<mosaic_0001>
module attributes {stable_mosaic.version = 11 : i64} {
  func.func @_conv_bn_act_kernel(%arg0: i32, %arg1: memref<4x16xf32, #tpu.memory_space<vmem>>, %arg2: memref<4x1xf32, #tpu.memory_space<vmem>>, %arg3: memref<4x1xf32, #tpu.memory_space<vmem>>, %arg4: memref<16x256xf32, #tpu.memory_space<vmem>>, %arg5: memref<1x1xf32, #tpu.memory_space<vmem>>, %arg6: memref<4x256xf32, #tpu.memory_space<vmem>>) attributes {dimension_semantics = [#tpu.dimension_semantics<parallel>], iteration_bounds = array<i64: 2>, scalar_prefetch = 0 : i64, scratch_operands = 0 : i64, tpu.core_type = #tpu.core_type<tc>, window_params = [{pipeline_mode = #tpu.pipeline_mode<synchronous>, transform_indices = @transform_0, window_bounds = array<i64: 4, 16>}, {pipeline_mode = #tpu.pipeline_mode<synchronous>, transform_indices = @transform_1, window_bounds = array<i64: 4, 1>}, {pipeline_mode = #tpu.pipeline_mode<synchronous>, transform_indices = @transform_2, window_bounds = array<i64: 4, 1>}, {transform_indices = @transform_3, window_bounds = array<i64: 16, 256>}, {pipeline_mode = #tpu.pipeline_mode<synchronous>, transform_indices = @transform_4, window_bounds = array<i64: 1, 1>}, {transform_indices = @transform_5, window_bounds = array<i64: 4, 256>}]} {
    %c0 = arith.constant 0 : index
    %c0_0 = arith.constant 0 : index
    %0 = vector.load %arg1[%c0, %c0_0] : memref<4x16xf32, #tpu.memory_space<vmem>>, vector<4x16xf32>
    %c0_1 = arith.constant 0 : index
    %c0_2 = arith.constant 0 : index
    %1 = vector.load %arg4[%c0_1, %c0_2] : memref<16x256xf32, #tpu.memory_space<vmem>>, vector<16x256xf32>
    %cst = arith.constant dense<0.000000e+00> : vector<4x256xf32>
    %2 = tpu.matmul %0, %1, %cst {dimension_numbers = #tpu.dot_dimension_numbers<[1], [0], [0], [1], [0, 0, 1, 1], [], []>} : vector<4x16xf32>, vector<16x256xf32>, vector<4x256xf32> -> vector<4x256xf32>
    %c0_3 = arith.constant 0 : index
    %c0_4 = arith.constant 0 : index
    %3 = vector.load %arg2[%c0_3, %c0_4] : memref<4x1xf32, #tpu.memory_space<vmem>>, vector<4x1xf32>
    %4 = vector.broadcast %3 : vector<4x1xf32> to vector<4x256xf32>
    %5 = arith.mulf %2, %4 : vector<4x256xf32>
    %c0_5 = arith.constant 0 : index
    %c0_6 = arith.constant 0 : index
    %6 = vector.load %arg3[%c0_5, %c0_6] : memref<4x1xf32, #tpu.memory_space<vmem>>, vector<4x1xf32>
    %7 = vector.broadcast %6 : vector<4x1xf32> to vector<4x256xf32>
    %8 = arith.addf %5, %7 : vector<4x256xf32>
    %cst_7 = arith.constant 0.000000e+00 : f32
    %9 = vector.broadcast %cst_7 : f32 to vector<4x256xf32>
    %10 = arith.maximumf %8, %9 : vector<4x256xf32>
    %c0_8 = arith.constant 0 : index
    %c0_9 = arith.constant 0 : index
    %11 = vector.load %arg6[%c0_8, %c0_9] : memref<4x256xf32, #tpu.memory_space<vmem>>, vector<4x256xf32>
    tpu.vector_store %arg6[%c0_8, %c0_9], %10 {strides = array<i32>} : memref<4x256xf32, #tpu.memory_space<vmem>>, vector<4x256xf32>,
    return
  }
  func.func @transform_0(%arg0: i32) -> (i32, i32) {
    %c0_i32 = arith.constant 0 : i32
    %c0_i32_0 = arith.constant 0 : i32
    %c0_i32_1 = arith.constant 0 : i32
    return %c0_i32, %c0_i32_0 : i32, i32
  }
  func.func @transform_1(%arg0: i32) -> (i32, i32) {
    %c0_i32 = arith.constant 0 : i32
    %c0_i32_0 = arith.constant 0 : i32
    %c0_i32_1 = arith.constant 0 : i32
    return %c0_i32, %c0_i32_0 : i32, i32
  }
  func.func @transform_2(%arg0: i32) -> (i32, i32) {
    %c0_i32 = arith.constant 0 : i32
    %c0_i32_0 = arith.constant 0 : i32
    %c0_i32_1 = arith.constant 0 : i32
    return %c0_i32, %c0_i32_0 : i32, i32
  }
  func.func @transform_3(%arg0: i32) -> (i32, i32) {
    %c0_i32 = arith.constant 0 : i32
    %c0_i32_0 = arith.constant 0 : i32
    return %c0_i32, %arg0 : i32, i32
  }
  func.func @transform_4(%arg0: i32) -> (i32, i32) {
    %c0_i32 = arith.constant 0 : i32
    %c0_i32_0 = arith.constant 0 : i32
    %c0_i32_1 = arith.constant 0 : i32
    return %c0_i32, %c0_i32_0 : i32, i32
  }
  func.func @transform_5(%arg0: i32) -> (i32, i32) {
    %c0_i32 = arith.constant 0 : i32
    %c0_i32_0 = arith.constant 0 : i32
    return %c0_i32, %arg0 : i32, i32
  }
}

module attributes {stable_mosaic.version = 11 : i64} {
  func.func @_fused_tail_kernel(%arg0: i32, %arg1: memref<4x36xf32, #tpu.memory_space<vmem>>, %arg2: memref<4x1xf32, #tpu.memory_space<vmem>>, %arg3: memref<4x1xf32, #tpu.memory_space<vmem>>, %arg4: memref<16x4xf32, #tpu.memory_space<vmem>>, %arg5: memref<16x1xf32, #tpu.memory_space<vmem>>, %arg6: memref<16x1xf32, #tpu.memory_space<vmem>>, %arg7: memref<36x256xf32, #tpu.memory_space<vmem>>, %arg8: memref<16x256xf32, #tpu.memory_space<vmem>>, %arg9: memref<1x1xf32, #tpu.memory_space<vmem>>, %arg10: memref<16x256xf32, #tpu.memory_space<vmem>>) attributes {dimension_semantics = [#tpu.dimension_semantics<parallel>], iteration_bounds = array<i64: 2>, scalar_prefetch = 0 : i64, scratch_operands = 0 : i64, tpu.core_type = #tpu.core_type<tc>, window_params = [{pipeline_mode = #tpu.pipeline_mode<synchronous>, transform_indices = @transform_0, window_bounds = array<i64: 4, 36>}, {pipeline_mode = #tpu.pipeline_mode<synchronous>, transform_indices = @transform_1, window_bounds = array<i64: 4, 1>}, {pipeline_mode = #tpu.pipeline_mode<synchronous>, transform_indices = @transform_2, window_bounds = array<i64: 4, 1>}, {pipeline_mode = #tpu.pipeline_mode<synchronous>, transform_indices = @transform_3, window_bounds = array<i64: 16, 4>}, {pipeline_mode = #tpu.pipeline_mode<synchronous>, transform_indices = @transform_4, window_bounds = array<i64: 16, 1>}, {pipeline_mode = #tpu.pipeline_mode<synchronous>, transform_indices = @transform_5, window_bounds = array<i64: 16, 1>}, {transform_indices = @transform_6, window_bounds = array<i64: 36, 256>}, {transform_indices = @transform_7, window_bounds = array<i64: 16, 256>}, {pipeline_mode = #tpu.pipeline_mode<synchronous>, transform_indices = @transform_8, window_bounds = array<i64: 1, 1>}, {transform_indices = @transform_9, window_bounds = array<i64: 16, 256>}]} {
    %c0 = arith.constant 0 : index
    %c0_0 = arith.constant 0 : index
    %0 = vector.load %arg1[%c0, %c0_0] : memref<4x36xf32, #tpu.memory_space<vmem>>, vector<4x36xf32>
    %c0_1 = arith.constant 0 : index
    %c0_2 = arith.constant 0 : index
    %1 = vector.load %arg7[%c0_1, %c0_2] : memref<36x256xf32, #tpu.memory_space<vmem>>, vector<36x256xf32>
    %cst = arith.constant dense<0.000000e+00> : vector<4x256xf32>
    %2 = tpu.matmul %0, %1, %cst {dimension_numbers = #tpu.dot_dimension_numbers<[1], [0], [0], [1], [0, 0, 1, 1], [], []>} : vector<4x36xf32>, vector<36x256xf32>, vector<4x256xf32> -> vector<4x256xf32>
    %c0_3 = arith.constant 0 : index
    %c0_4 = arith.constant 0 : index
    %3 = vector.load %arg2[%c0_3, %c0_4] : memref<4x1xf32, #tpu.memory_space<vmem>>, vector<4x1xf32>
    %4 = vector.broadcast %3 : vector<4x1xf32> to vector<4x256xf32>
    %5 = arith.mulf %2, %4 : vector<4x256xf32>
    %c0_5 = arith.constant 0 : index
    %c0_6 = arith.constant 0 : index
    %6 = vector.load %arg3[%c0_5, %c0_6] : memref<4x1xf32, #tpu.memory_space<vmem>>, vector<4x1xf32>
    %7 = vector.broadcast %6 : vector<4x1xf32> to vector<4x256xf32>
    %8 = arith.addf %5, %7 : vector<4x256xf32>
    %cst_7 = arith.constant 0.000000e+00 : f32
    %9 = vector.broadcast %cst_7 : f32 to vector<4x256xf32>
    %10 = arith.maximumf %8, %9 : vector<4x256xf32>
    %c0_8 = arith.constant 0 : index
    %c0_9 = arith.constant 0 : index
    %11 = vector.load %arg4[%c0_8, %c0_9] : memref<16x4xf32, #tpu.memory_space<vmem>>, vector<16x4xf32>
    %cst_10 = arith.constant dense<0.000000e+00> : vector<16x256xf32>
    %12 = tpu.matmul %11, %10, %cst_10 {dimension_numbers = #tpu.dot_dimension_numbers<[1], [0], [0], [1], [0, 0, 1, 1], [], []>} : vector<16x4xf32>, vector<4x256xf32>, vector<16x256xf32> -> vector<16x256xf32>
    %c0_11 = arith.constant 0 : index
    %c0_12 = arith.constant 0 : index
    %13 = vector.load %arg5[%c0_11, %c0_12] : memref<16x1xf32, #tpu.memory_space<vmem>>, vector<16x1xf32>
    %14 = vector.broadcast %13 : vector<16x1xf32> to vector<16x256xf32>
    %15 = arith.mulf %12, %14 : vector<16x256xf32>
    %c0_13 = arith.constant 0 : index
    %c0_14 = arith.constant 0 : index
    %16 = vector.load %arg6[%c0_13, %c0_14] : memref<16x1xf32, #tpu.memory_space<vmem>>, vector<16x1xf32>
    %17 = vector.broadcast %16 : vector<16x1xf32> to vector<16x256xf32>
    %18 = arith.addf %15, %17 : vector<16x256xf32>
    %cst_15 = arith.constant 0.000000e+00 : f32
    %19 = vector.broadcast %cst_15 : f32 to vector<16x256xf32>
    %20 = arith.maximumf %18, %19 : vector<16x256xf32>
    %c0_16 = arith.constant 0 : index
    %c0_17 = arith.constant 0 : index
    %21 = vector.load %arg8[%c0_16, %c0_17] : memref<16x256xf32, #tpu.memory_space<vmem>>, vector<16x256xf32>
    %22 = arith.addf %20, %21 : vector<16x256xf32>
    %cst_18 = arith.constant 0.000000e+00 : f32
    %23 = vector.broadcast %cst_18 : f32 to vector<16x256xf32>
    %24 = arith.maximumf %22, %23 : vector<16x256xf32>
    %c0_19 = arith.constant 0 : index
    %c0_20 = arith.constant 0 : index
    %25 = vector.load %arg10[%c0_19, %c0_20] : memref<16x256xf32, #tpu.memory_space<vmem>>, vector<16x256xf32>
    tpu.vector_store %arg10[%c0_19, %c0_20], %24 {strides = array<i32>} : memref<16x256xf32, #tpu.memory_space<vmem>>, vector<16x256xf32>,
    return
  }
  func.func @transform_0(%arg0: i32) -> (i32, i32) {
    %c0_i32 = arith.constant 0 : i32
    %c0_i32_0 = arith.constant 0 : i32
    %c0_i32_1 = arith.constant 0 : i32
    return %c0_i32, %c0_i32_0 : i32, i32
  }
  func.func @transform_1(%arg0: i32) -> (i32, i32) {
    %c0_i32 = arith.constant 0 : i32
    %c0_i32_0 = arith.constant 0 : i32
    %c0_i32_1 = arith.constant 0 : i32
    return %c0_i32, %c0_i32_0 : i32, i32
  }
  func.func @transform_2(%arg0: i32) -> (i32, i32) {
    %c0_i32 = arith.constant 0 : i32
    %c0_i32_0 = arith.constant 0 : i32
    %c0_i32_1 = arith.constant 0 : i32
    return %c0_i32, %c0_i32_0 : i32, i32
  }
  func.func @transform_3(%arg0: i32) -> (i32, i32) {
    %c0_i32 = arith.constant 0 : i32
    %c0_i32_0 = arith.constant 0 : i32
    %c0_i32_1 = arith.constant 0 : i32
    return %c0_i32, %c0_i32_0 : i32, i32
  }
  func.func @transform_4(%arg0: i32) -> (i32, i32) {
    %c0_i32 = arith.constant 0 : i32
    %c0_i32_0 = arith.constant 0 : i32
    %c0_i32_1 = arith.constant 0 : i32
    return %c0_i32, %c0_i32_0 : i32, i32
  }
  func.func @transform_5(%arg0: i32) -> (i32, i32) {
    %c0_i32 = arith.constant 0 : i32
    %c0_i32_0 = arith.constant 0 : i32
    %c0_i32_1 = arith.constant 0 : i32
    return %c0_i32, %c0_i32_0 : i32, i32
  }
  func.func @transform_6(%arg0: i32) -> (i32, i32) {
    %c0_i32 = arith.constant 0 : i32
    %c0_i32_0 = arith.constant 0 : i32
    return %c0_i32, %arg0 : i32, i32
  }
  func.func @transform_7(%arg0: i32) -> (i32, i32) {
    %c0_i32 = arith.constant 0 : i32
    %c0_i32_0 = arith.constant 0 : i32
    return %c0_i32, %arg0 : i32, i32
  }
  func.func @transform_8(%arg0: i32) -> (i32, i32) {
    %c0_i32 = arith.constant 0 : i32
    %c0_i32_0 = arith.constant 0 : i32
    %c0_i32_1 = arith.constant 0 : i32
    return %c0_i32, %c0_i32_0 : i32, i32
  }
  func.func @transform_9(%arg0: i32) -> (i32, i32) {
    %c0_i32 = arith.constant 0 : i32
    %c0_i32_0 = arith.constant 0 : i32
    return %c0_i32, %arg0 : i32, i32
  }
}

</mosaic_0001>

<bundles_post_ra>
// kernel: forward.2
= control target key start
LH: loop header
LB: loop body
LE: loop exit
PB: predicated region body
PF: predicated region fallthrough
CT: control target
= control target key end

     0   :  { %s488_s18 = smov 0   ;;  %s490_s19 = smov 0   ;;  %s549_s0 = inlined_call_operand.vmem [shape: f32[4,16], index: 0, kind: input, shape index: {}]   ;;  %s550_s1 = inlined_call_operand.vmem [shape: f32[4,1], index: 1, kind: input, shape index: {}]   ;;  %s551_s2 = inlined_call_operand.vmem [shape: f32[4,1], index: 2, kind: input, shape index: {}]   ;;  %s552_s3 = inlined_call_operand.vmem [shape: f32[16,512], index: 3, kind: input, shape index: {}]   ;;  %s553_s4 = inlined_call_operand.<no memory space> [shape: f32[1,1], index: 4, kind: input, shape index: {}]   ;;  %s554_s5 = inlined_call_operand.vmem [shape: f32[4,512], index: 5, kind: output, shape index: {}]  }
   0x1   :  { %s492_s20 = smov 0  }
   0x2 LB: > { %s391_s4 = sadd.s32 4294967295, %s455_s20   ;;  %s505_s21 = sadd.s32 1, %s455_s20   ;;  %s455_s20 = sphi %s492_s20, %s557_s20   ;;  %s451_s19 = sphi %s490_s19, %s556_s19   ;;  %s447_s18 = sphi %s488_s18, %s555_s18  }
   0x3   : > { %s84_s22 = ssub.s32 %s455_s20, %s505_s21  ;;  %s87_s23 = sadd.s32 1, %s451_s19 }
   0x4   : > { %p85_p0 = scmp.eq.s32.totalorder %s84_s22, 0  ;;  %p94_p1 = scmp.ne.s32.totalorder %s451_s19, %s447_s18 }
   0x5   : > { %p95_p2 = scmp.eq.s32.totalorder %s455_s20, 0  ;;  %p394_p4 = scmp.ge.s32.totalorder %s455_s20, 2 }
   0x6   : > { %s514_s24 = scalar_select %p85_p0, %s451_s19, %s87_s23  }
   0x7   : > { %p96_p3 = por %p95_p2, %p94_p1  ;;  %179 = sbr.rel (%p394_p4) target bundleno = 20 (0x14), region = 32 }
   0xc   : > { %182 = sbr.rel (!%p96_p3) target bundleno = 20 (0x14), region = 36  ;;  %s184_s25 = sand.u32 (%p96_p3), 1, %s451_s19  }
   0xd   : > { %s406_s26 = sshll.u32 (%p96_p3), %s455_s20, 4  ;;  %s395_s27 = sshll.u32 (%p96_p3), %s184_s25, 5 }
   0xe   : > { %s189_s30 = scalar_lea.vmem (%p96_p3), %s552_s3, %s406_s26  ;;  %s186_s6 = scalar_lea.vmem (%p96_p3), [#allocation3], %s395_s27 }
   0xf   : > { %v202_v0 = vld [vmem:[%s189_s30] sm:$0xff] (%p96_p3)  ;;  %v204_v1 = vld [vmem:[%s189_s30 + $0x8] sm:$0xff] (%p96_p3) }
  0x10   : > { %v206_v2 = vld [vmem:[%s189_s30 + $0x20] sm:$0xff] (%p96_p3)  ;;  %203 = vst [vmem:[%s186_s6] sm:$0xff] (%p96_p3), %v202_v0  ;;  %v208_v3 = vld [vmem:[%s189_s30 + $0x28] sm:$0xff] (%p96_p3) }
  0x11   : > { %205 = vst [vmem:[%s186_s6 + $0x8] sm:$0xff] %v204_v1 }
  0x12   : > { %207 = vst [vmem:[%s186_s6 + $0x10] sm:$0xff] %v206_v2 }
  0x13   : > { %209 = vst [vmem:[%s186_s6 + $0x18] sm:$0xff] %v208_v3 }
  0x14 PF: > { %p398_p5 = scmp.ge.s32.totalorder %s455_s20, 1  ;;  %p214_p6 = scmp.lt.s32.totalorder %s455_s20, 3 }
  0x16   : > { %p215_p7 = pnand %p398_p5, %p214_p6 }
  0x17   : > { %s221_s9 = sand.u32 (!%p215_p7), 1, %s447_s18   ;;  %s400_s16 = sshll.u32 (!%p215_p7), %s391_s4, 1 }
  0x18   : > { %218 = sbr.rel (%p215_p7) target bundleno = 170 (0xaa), region = 59  ;;  %s399_s10 = sshll.u32 (!%p215_p7), %s221_s9, 5 }
  0x19   : > { %s223_s11 = scalar_lea.vmem (!%p215_p7), [#allocation3], %s399_s10  ;;  %p250_p8 = scmp.lt.s32.totalorder (!%p215_p7), %s400_s16, 3 }
  0x1d   : > { %v304_v4 = vld [vmem:[%s550_s1] sm:$0xf]  ;;  %v457_v5 = vmov 0   ;;  %v258_v6 = vld [vmem:[%s223_s11 + $0x10] sm:$0xff]  ;;  %v259_v7 = vld [vmem:[%s223_s11 + $0x18] sm:$0xff]  ;;  %vm260_vm0 = vcmask 130048  }
  0x1e   : > { %432 = vset.pattern.permute.xlu0 %v457_v5  ;;  %v256_v8 = vld [vmem:[%s223_s11] sm:$0xff]  ;;  %278 = vmatpush.msra.mxu0 %v258_v6  ;;  %v257_v9 = vld [vmem:[%s223_s11 + $0x8] sm:$0xff]  ;;  %s559_s16 = smov (!%p250_p8, %s400_s16), 3  ;;  %vm325_vm1 = vcmask 1043456  }
  0x1f   : > { %307 = vperm.xlu0 %432, %v304_v4   ;;  %298 = vmatpush.msra.mxu1 %v259_v7  ;;  %v255_v10 = vld [vmem:[%s549_s0] sm:$0xf]  ;;  %s401_s17 = sshll.u32 %s559_s16, 2 }
  0x20   : > { %279 = vmatpush.msra.mxu0 %v256_v8  ;;  %v312_v11 = vld [vmem:[%s551_s2] sm:$0xf]  ;;  %s253_s23 = scalar_lea.vmem %s554_s5, %s401_s17 }
  0x21   : > { %299 = vmatpush.msra.mxu1 %v257_v9  ;;  %402 = vmatmul.msk.f32.vlgmr.msra.gmra.mxu0 %vm260_vm0, %v255_v10 }
  0x22   : > { %403 = vmatmul.msk.f32.vlgmr.msra.gmra.mxu1 %vm260_vm0, %v255_v10 }
  0x27   : > { %315 = vperm.xlu0 %432, %v312_v11  }
  0x91   : > { %v308_v12 = vpop.permute.xlu0 %307 }
  0x99   : > { %v316_v17 = vpop.permute.xlu0 %315 }
  0x9e   : > { %v281_v13 = vpop.f32.mrf.mxu0 }
  0x9f   : > { %v301_v14 = vpop.f32.mrf.mxu1  ;;  %v310_v15 = vmul.f32 %v308_v12, %v281_v13 }
  0xa0   : > { %v311_v16 = vmul.f32 %v308_v12, %v301_v14 }
  0xa1   : > { %v318_v18 = vadd.f32 %v316_v17, %v310_v15 }
  0xa2   : > { %v319_v19 = vadd.f32 %v316_v17, %v311_v16 }
  0xa3   : > { %v320_v21 = vmax.f32 %v318_v18, 0.0 }
  0xa4   : > { %v321_v20 = vmax.f32 %v319_v19, 0.0 }
  0xa6   : > { %v324_v22 = vrot.slane %v321_v20, 4 }
  0xa8   : > { %v326_v23 = vsel %vm325_vm1, %v320_v21, %v324_v22 }
  0xa9   : > { %328 = vst [vmem:[%s253_s23] sm:$0xff] %v326_v23 }
  0xaa PF: > { %p14_p9 = scmp.ge.s32.totalorder %s505_s21, 4   ;;  %s555_s18 = smov %s451_s19 }
  0xab   : > { %s556_s19 = smov %s514_s24  ;;  %s557_s20 = smov %s505_s21 }
  0xac   :  { %16 = sbr.rel (!%p14_p9) target bundleno = 2 (0x2), region = 98 }

// kernel: forward.3
= control target key start
LH: loop header
LB: loop body
LE: loop exit
PB: predicated region body
PF: predicated region fallthrough
CT: control target
= control target key end

     0   :  { %s851_s30 = smov 0   ;;  %s853_s10 = smov 0   ;;  %s959_s0 = inlined_call_operand.vmem [shape: f32[4,36], index: 0, kind: input, shape index: {}]   ;;  %s960_s1 = inlined_call_operand.vmem [shape: f32[4,1], index: 1, kind: input, shape index: {}]   ;;  %s961_s2 = inlined_call_operand.vmem [shape: f32[4,1], index: 2, kind: input, shape index: {}]   ;;  %s962_s3 = inlined_call_operand.vmem [shape: f32[16,4], index: 3, kind: input, shape index: {}]   ;;  %s963_s4 = inlined_call_operand.vmem [shape: f32[16,1], index: 4, kind: input, shape index: {}]   ;;  %s964_s5 = inlined_call_operand.vmem [shape: f32[16,1], index: 5, kind: input, shape index: {}]   ;;  %s965_s6 = inlined_call_operand.vmem [shape: f32[36,512], index: 6, kind: input, shape index: {}]   ;;  %s966_s7 = inlined_call_operand.vmem [shape: f32[16,512], index: 7, kind: input, shape index: {}]   ;;  %s967_s8 = inlined_call_operand.<no memory space> [shape: f32[1,1], index: 8, kind: input, shape index: {}]   ;;  %s968_s9 = inlined_call_operand.vmem [shape: f32[16,512], index: 9, kind: output, shape index: {}]  }
   0x1   :  { %s855_s11 = smov 0  }
   0x2 LB: > { %s716_s8 = sadd.s32 4294967295, %s798_s11   ;;  %s868_s12 = sadd.s32 1, %s798_s11   ;;  %s798_s11 = sphi %s855_s11, %s973_s11   ;;  %s794_s10 = sphi %s853_s10, %s972_s10   ;;  %s790_s30 = sphi %s851_s30, %s971_s30  }
   0x3   : > { %s151_s13 = ssub.s32 %s798_s11, %s868_s12  ;;  %s154_s14 = sadd.s32 1, %s794_s10 }
   0x4   : > { %p152_p0 = scmp.eq.s32.totalorder %s151_s13, 0  ;;  %p161_p1 = scmp.ne.s32.totalorder %s794_s10, %s790_s30 }
   0x5   : > { %p162_p2 = scmp.eq.s32.totalorder %s798_s11, 0  ;;  %p238_p3 = scmp.eq.s32.totalorder %s716_s8, 1 }
   0x6   : > { %s879_s15 = scalar_select %p152_p0, %s794_s10, %s154_s14  }
   0x7   : > { %p881_p4 = por %p162_p2, %p161_p1  ;;  %p885_p5 = por %p238_p3, %p161_p1 }
   0x8   : > { %p719_p6 = scmp.ge.s32.totalorder %s798_s11, 2 }
   0xa   : > { %281 = sbr.rel (%p719_p6) target bundleno = 37 (0x25), region = 44 }
   0xf   : > { %284 = sbr.rel (!%p881_p4) target bundleno = 29 (0x1d), region = 48  ;;  %s286_s18 = sand.u32 (%p881_p4), 1, %s794_s10  }
  0x10   : > { %s743_s19 = sshll.u32 (%p881_p4), %s798_s11, 4  ;;  %s746_s20 = smul.u32 (%p881_p4), 80, %s286_s18 }
  0x11   : > { %s291_s23 = scalar_lea.vmem (%p881_p4), %s965_s6, %s743_s19 }
  0x12   : > { %v304_v0 = vld [vmem:[%s291_s23] sm:$0xff] (%p881_p4)  ;;  %v306_v1 = vld [vmem:[%s291_s23 + $0x8] sm:$0xff] (%p881_p4)  ;;  %s288_s24 = scalar_lea.vmem (%p881_p4), [#allocation3], %s746_s20 }
  0x13   : > { %v308_v2 = vld [vmem:[%s291_s23 + $0x20] sm:$0xff] (%p881_p4)  ;;  %305 = vst [vmem:[%s288_s24] sm:$0xff] (%p881_p4), %v304_v0  ;;  %v310_v3 = vld [vmem:[%s291_s23 + $0x28] sm:$0xff] (%p881_p4) }
  0x14   : > { %307 = vst [vmem:[%s288_s24 + $0x8] sm:$0xff] %v306_v1  ;;  %v312_v4 = vld [vmem:[%s291_s23 + $0x40] sm:$0xff]  ;;  %v314_v5 = vld [vmem:[%s291_s23 + $0x48] sm:$0xff] }
  0x15   : > { %309 = vst [vmem:[%s288_s24 + $0x10] sm:$0xff] %v308_v2  ;;  %v316_v6 = vld [vmem:[%s291_s23 + $0x60] sm:$0xff]  ;;  %v318_v7 = vld [vmem:[%s291_s23 + $0x68] sm:$0xff] }
  0x16   : > { %311 = vst [vmem:[%s288_s24 + $0x18] sm:$0xff] %v310_v3  ;;  %v320_v8 = vld [vmem:[%s291_s23 + $0x80] sm:$0xff]  ;;  %v322_v9 = vld [vmem:[%s291_s23 + $0x88] sm:$0xff] }
  0x17   : > { %313 = vst [vmem:[%s288_s24 + $0x20] sm:$0xff] %v312_v4 }
  0x18   : > { %315 = vst [vmem:[%s288_s24 + $0x28] sm:$0xff] %v314_v5 }
  0x19   : > { %317 = vst [vmem:[%s288_s24 + $0x30] sm:$0xff] %v316_v6 }
  0x1a   : > { %319 = vst [vmem:[%s288_s24 + $0x38] sm:$0xff] %v318_v7 }
  0x1b   : > { %321 = vst [vmem:[%s288_s24 + $0x40] sm:$0xff] %v320_v8 }
  0x1c   : > { %323 = vst [vmem:[%s288_s24 + $0x48] sm:$0xff] %v322_v9 }
  0x1d PF: > { %329 = sbr.rel (!%p881_p4) target bundleno = 37 (0x25), region = 71  ;;  %s331_s25 = sand.u32 (%p881_p4), 1, %s794_s10  }
  0x1e   : > { %s744_s26 = sshll.u32 (%p881_p4), %s798_s11, 4  ;;  %s722_s27 = sshll.u32 (%p881_p4), %s331_s25, 5 }
  0x1f   : > { %s336_s13 = scalar_lea.vmem (%p881_p4), %s966_s7, %s744_s26  ;;  %s333_s14 = scalar_lea.vmem (%p881_p4), [#allocation4], %s722_s27 }
  0x20   : > { %v349_v10 = vld [vmem:[%s336_s13] sm:$0xff] (%p881_p4)  ;;  %v351_v11 = vld [vmem:[%s336_s13 + $0x8] sm:$0xff] (%p881_p4) }
  0x21   : > { %v353_v12 = vld [vmem:[%s336_s13 + $0x20] sm:$0xff] (%p881_p4)  ;;  %350 = vst [vmem:[%s333_s14] sm:$0xff] (%p881_p4), %v349_v10  ;;  %v355_v13 = vld [vmem:[%s336_s13 + $0x28] sm:$0xff] (%p881_p4) }
  0x22   : > { %352 = vst [vmem:[%s333_s14 + $0x8] sm:$0xff] %v351_v11 }
  0x23   : > { %354 = vst [vmem:[%s333_s14 + $0x10] sm:$0xff] %v353_v12 }
  0x24   : > { %356 = vst [vmem:[%s333_s14 + $0x18] sm:$0xff] %v355_v13 }
  0x25 PF: > { %p725_p7 = scmp.ge.s32.totalorder %s798_s11, 1  ;;  %p361_p8 = scmp.lt.s32.totalorder %s798_s11, 3 }
  0x27   : > { %p362_p9 = pnand %p725_p7, %p361_p8 }
  0x28   : > { %s368_s16 = sand.u32 (!%p362_p9), 1, %s790_s30  }
  0x29   : > { %365 = sbr.rel (%p362_p9) target bundleno = 351 (0x15f), region = 94  ;;  %s726_s24 = sshll.u32 (!%p362_p9), %s368_s16, 5 }
  0x2a   : > { %s747_s20 = smul.u32 (!%p362_p9), 80, %s368_s16  ;;  %s377_s25 = scalar_lea.vmem (!%p362_p9), [#allocation4], %s726_s24 }
  0x2b   : > { %s412_s30 = scalar_lea.vmem (!%p362_p9), [#allocation5], %s726_s24 }
  0x2c   : > { %s370_s21 = scalar_lea.vmem (!%p362_p9), [#allocation3], %s747_s20 }
  0x2e   : > { %v478_v14 = vld [vmem:[%s960_s1] sm:$0xf]  ;;  %v800_v15 = vmov 0   ;;  %vm431_vm0 = vcmask 1043456   ;;  %v426_v17 = vld [vmem:[%s370_s21 + $0x48] sm:$0xf] }
  0x2f   : > { %773 = vset.pattern.permute.xlu0 %v800_v15  ;;  %774 = vset.pattern.permute.xlu1 %v800_v15  ;;  %v425_v16 = vld [vmem:[%s370_s21 + $0x40] sm:$0xf]  ;;  %v423_v18 = vld [vmem:[%s370_s21 + $0x30] sm:$0xff]  ;;  %v424_v19 = vld [vmem:[%s370_s21 + $0x38] sm:$0xff]  ;;  %vm427_vm1 = vcmask 293888   ;;  %vm498_vm2 = vcmask 31744  }
  0x30   : > { %481 = vperm.xlu0 %773, %v478_v14   ;;  %775 = vset.pattern.permute.xlu2 %v800_v15  ;;  %v421_v20 = vld [vmem:[%s370_s21 + $0x20] sm:$0xff]  ;;  %v422_v21 = vld [vmem:[%s370_s21 + $0x28] sm:$0xff]  ;;  %v419_v23 = vld [vmem:[%s370_s21 + $0x10] sm:$0xff]  ;;  %s745_s16 = sshll.u32 (%p885_p5), %s716_s8, 4 }
  0x31   : > { %728 = vmatpush.msk.msra.mxu0 %vm431_vm0, %v425_v16  ;;  %730 = vmatpush.msk.msra.mxu1 %vm431_vm0, %v426_v17  ;;  %v486_v22 = vld [vmem:[%s961_s2] sm:$0xf]  ;;  %v420_v24 = vld [vmem:[%s370_s21 + $0x18] sm:$0xff]  ;;  %v418_v26 = vld [vmem:[%s370_s21 + $0x8] sm:$0xff]  ;;  %s618_s28 = scalar_lea.vmem (%p885_p5), %s968_s9, %s745_s16 }
  0x32   : > { %v417_v25 = vld [vmem:[%s370_s21] sm:$0xff]  ;;  %v558_v30 = vld [vmem:[%s963_s4 + $0x8] sm:$0xff]  ;;  %v596_v5 = vld [vmem:[%s377_s25 + $0x18] sm:$0xff] }
  0x33   : > { %450 = vmatpush.msra.mxu0 %v423_v18  ;;  %470 = vmatpush.msra.mxu1 %v424_v19  ;;  %v416_v27 = vld [vmem:[%s959_s0] sm:$0xf]  ;;  %v574_v31 = vld [vmem:[%s964_s5 + $0x8] sm:$0xff]  ;;  %v595_v4 = vld [vmem:[%s377_s25 + $0x10] sm:$0xff] }
  0x34   : > { %v557_v28 = vld [vmem:[%s963_s4] sm:$0xff]  ;;  %v497_v43 = vld [vmem:[%s962_s3 + $0x8] sm:$0xff] }
  0x35   : > { %451 = vmatpush.msra.mxu0 %v421_v20  ;;  %471 = vmatpush.msra.mxu1 %v422_v21  ;;  %v573_v29 = vld [vmem:[%s964_s5] sm:$0xff]  ;;  %v594_v53 = vld [vmem:[%s377_s25 + $0x8] sm:$0xff] }
  0x36   : > { %561 = vperm.xlu1 %774, %v557_v28   ;;  %577 = vperm.xlu2 %775, %v573_v29   ;;  %v496_v42 = vld [vmem:[%s962_s3] sm:$0xff] }
  0x37   : > { %452 = vmatpush.msra.mxu0 %v419_v23  ;;  %472 = vmatpush.msra.mxu1 %v420_v24  ;;  %v593_v52 = vld [vmem:[%s377_s25] sm:$0xff] }
  0x38   : > { %489 = vperm.xlu0 %773, %v486_v22  }
  0x39   : > { %453 = vmatpush.msra.mxu0 %v417_v25  ;;  %473 = vmatpush.msra.mxu1 %v418_v26 }
  0x3a   : > { %729 = vmatmul.msk.f32.vlgmr.msra.gmra.mxu0 %vm427_vm1, %v416_v27  ;;  %731 = vmatmul.msk.f32.vlgmr.msra.gmra.mxu1 %vm427_vm1, %v416_v27 }
  0x3e   : > { %566 = vperm.xlu1 %774, %v558_v30   ;;  %582 = vperm.xlu2 %775, %v574_v31  }
  0x90   : > { %v578_v45 = vpop.permute.xlu2 %577 }
  0x98   : > { %v583_v1 = vpop.permute.xlu2 %582 }
  0xa2   : > { %v482_v32 = vpop.permute.xlu0 %481 }
  0xa8   : > { %v562_v44 = vpop.permute.xlu1 %561 }
  0xaa   : > { %v490_v37 = vpop.permute.xlu0 %489 }
  0xb0   : > { %v567_v56 = vpop.permute.xlu1 %566 }
  0xb7   : > { %v455_v33 = vpop.f32.mrf.mxu0  ;;  %v475_v34 = vpop.f32.mrf.mxu1 }
  0xb8   : > { %v484_v35 = vmul.f32 %v482_v32, %v455_v33  ;;  %v485_v36 = vmul.f32 %v482_v32, %v475_v34 }
  0xba   : > { %v492_v38 = vadd.f32 %v490_v37, %v484_v35  ;;  %v493_v39 = vadd.f32 %v490_v37, %v485_v36 }
  0xbc   : > { %v494_v40 = vmax.f32 %v492_v38, 0.0  ;;  %v495_v41 = vmax.f32 %v493_v39, 0.0 }
  0xbe   : > { %732 = vmatpush.msk.msra.mxu2 %vm431_vm0, %v494_v40  ;;  %735 = vmatpush.msk.msra.mxu3 %vm431_vm0, %v495_v41 }
  0xbf   : > { %733 = vmatmul.msk.f32.vlgmr.msra.gmra.mxu2 %vm498_vm2, %v496_v42  ;;  %736 = vmatmul.msk.f32.vlgmr.msra.gmra.mxu3 %vm498_vm2, %v496_v42 }
  0xc7   : > { %734 = vmatmul.msk.f32.gmra.mxu2 %vm498_vm2, %v497_v43  ;;  %737 = vmatmul.msk.f32.gmra.mxu3 %vm498_vm2, %v497_v43 }
 0x142   : > { %v528_v46 = vpop.f32.mrf.mxu2  ;;  %v551_v47 = vpop.f32.mrf.mxu3 }
 0x143   : > { %v569_v48 = vmul.f32 %v562_v44, %v528_v46  ;;  %v570_v49 = vmul.f32 %v562_v44, %v551_v47 }
 0x145   : > { %v585_v50 = vadd.f32 %v578_v45, %v569_v48  ;;  %v586_v51 = vadd.f32 %v578_v45, %v570_v49 }
 0x147   : > { %v589_v54 = vmax.f32 %v585_v50, 0.0  ;;  %v590_v55 = vmax.f32 %v586_v51, 0.0 }
 0x149   : > { %v597_v57 = vadd.f32 %v593_v52, %v589_v54  ;;  %v598_v58 = vadd.f32 %v594_v53, %v590_v55 }
 0x14a   : > { %v531_v59 = vpop.f32.mrf.mxu2  ;;  %v554_v60 = vpop.f32.mrf.mxu3 }
 0x14b   : > { %v601_v61 = vmax.f32 %v597_v57, 0.0  ;;  %v602_v62 = vmax.f32 %v598_v58, 0.0  ;;  %v571_v63 = vmul.f32 %v567_v56, %v531_v59  ;;  %v572_v0 = vmul.f32 %v567_v56, %v554_v60 }
 0x14d   : > { %605 = vst [vmem:[%s412_s30] sm:$0xff] %v601_v61  ;;  %v587_v2 = vadd.f32 %v583_v1, %v571_v63  ;;  %v588_v3 = vadd.f32 %v583_v1, %v572_v0 }
 0x14e   : > { %606 = vst [vmem:[%s412_s30 + $0x8] sm:$0xff] %v602_v62 }
 0x14f   : > { %v591_v6 = vmax.f32 %v587_v2, 0.0  ;;  %v592_v7 = vmax.f32 %v588_v3, 0.0 }
 0x151   : > { %v599_v8 = vadd.f32 %v595_v4, %v591_v6  ;;  %v600_v9 = vadd.f32 %v596_v5, %v592_v7 }
 0x152   : > { %615 = sbr.rel (!%p885_p5) target bundleno = 351 (0x15f), region = 106 }
 0x153   : > { %v603_v10 = vmax.f32 %v599_v8, 0.0  ;;  %v604_v11 = vmax.f32 %v600_v9, 0.0 }
 0x154   : > { %v631_v12 = vld [vmem:[%s412_s30] sm:$0xff] (%p885_p5) }
 0x155   : > { %607 = vst [vmem:[%s412_s30 + $0x10] sm:$0xff] %v603_v10  ;;  %v633_v13 = vld [vmem:[%s412_s30 + $0x8] sm:$0xff] (%p885_p5) }
 0x156   : > { %608 = vst [vmem:[%s412_s30 + $0x18] sm:$0xff] %v604_v11 }
 0x157   : > { %632 = vst [vmem:[%s618_s28] sm:$0xff] %v631_v12 }
 0x158   : > { %634 = vst [vmem:[%s618_s28 + $0x8] sm:$0xff] %v633_v13 }
 0x15c   : > { %v635_v14 = vld [vmem:[%s412_s30 + $0x10] sm:$0xff] }
 0x15d   : > { %v637_v15 = vld [vmem:[%s412_s30 + $0x18] sm:$0xff]  ;;  %636 = vst [vmem:[%s618_s28 + $0x20] sm:$0xff] %v635_v14 }
 0x15e   : > { %638 = vst [vmem:[%s618_s28 + $0x28] sm:$0xff] %v637_v15 }
 0x15f PF: > { %p18_p10 = scmp.ge.s32.totalorder %s868_s12, 4   ;;  %s971_s30 = smov %s794_s10 }
 0x160   : > { %s972_s10 = smov %s879_s15  ;;  %s973_s11 = smov %s868_s12 }
 0x161   :  { %20 = sbr.rel (!%p18_p10) target bundleno = 2 (0x2), region = 168 }

</bundles_post_ra>
